<compile_context>
chip_gen: v6e
topology: v6e:2x2x1
jax: 0.10.0
libtpu: 0.0.40
codegen_flags: <defaults>
</compile_context>

<pallas_src>
import functools

import jax
import jax.numpy as jnp
from jax import lax
from jax.experimental import pallas as pl
from jax.experimental.pallas import tpu as pltpu

TEMPERATURE = 0.1


def _round_up(x, m):
    return ((x + m - 1) // m) * m


def _ce_kernel(x_ref, w_ref, y_ref, loss_ref, m_sc, l_sc, pos_sc, *,
               n_items, tn, inv_temp):
    # x_ref   : (TB, Kp)  bf16   [flattened image | one-hot(user)] features
    # w_ref   : (Kp, TN)  bf16   [W ; user_emb] stacked projection, item tile
    # y_ref   : (TB, 1)   i32    positive item index per row
    # loss_ref: (TB, 1)   f32    per-example NLL (written on last item tile)
    # m_sc / l_sc / pos_sc : (TB, 1) f32 online-softmax running state
    n_idx = pl.program_id(1)

    @pl.when(n_idx == 0)
    def _():
        m_sc[...] = jnp.full_like(m_sc, -jnp.inf)
        l_sc[...] = jnp.zeros_like(l_sc)
        pos_sc[...] = jnp.zeros_like(pos_sc)

    # Temperature-scaled logits for this item tile (bf16 in, f32 accumulate).
    s = jnp.dot(x_ref[...], w_ref[...],
                preferred_element_type=jnp.float32) * inv_temp        # (TB, TN)

    col = n_idx * tn + lax.broadcasted_iota(jnp.int32, s.shape, 1)    # (TB, TN)
    valid = col < n_items

    # Scaled logit of the positive item (exactly one match across all tiles).
    pos_sc[...] += jnp.sum(jnp.where(col == y_ref[...], s, 0.0),
                           axis=1, keepdims=True)

    # Online (flash-style) max / sum-exp across item tiles.
    s_masked = jnp.where(valid, s, -jnp.inf)
    m_new = jnp.maximum(m_sc[...], jnp.max(s_masked, axis=1, keepdims=True))
    alpha = jnp.exp(m_sc[...] - m_new)
    e = jnp.exp(s_masked - m_new)                    # padded columns -> exactly 0
    l_sc[...] = alpha * l_sc[...] + jnp.sum(e, axis=1, keepdims=True)
    m_sc[...] = m_new

    @pl.when(n_idx == pl.num_programs(1) - 1)
    def _():
        p_y = jnp.exp(pos_sc[...] - m_sc[...]) * pl.reciprocal(l_sc[...],
                                                               approx=True)
        loss_ref[...] = -jnp.log(p_y + 1e-9)


def mf_model_loss(img, user_id, ignore_mask, y, w, user_emb, *,
                  tb_max=128, tn_max=512):
    """JAX wrapper reproducing the realized forward semantics.

    img        : (B, C, H, W) f32
    user_id    : (B,)         i32
    ignore_mask: (B, M)       unused (matches reference -- sliced, never read)
    y          : (B, 1)       i32 positive item index
    w          : (C*H*W, N)   f32 encoder weight
    user_emb   : (U, N)       f32 user embedding table
    """
    B = img.shape[0]
    D = img.shape[1] * img.shape[2] * img.shape[3]
    U, N = user_emb.shape

    # ignore_mask[:, :N] -- intentionally unused, as in the reference.
    _ = ignore_mask[:, :N]

    # Fold the user-embedding gather into the matmul:
    #   [x | one-hot(uid)] @ [[W], [user_emb]] == x @ W + user_emb[uid]
    x_flat = img.reshape(B, D).astype(jnp.float32)
    onehot = (user_id.astype(jnp.int32)[:, None]
              == jnp.arange(U, dtype=jnp.int32)[None, :]).astype(jnp.float32)
    x_aug = jnp.concatenate([x_flat, onehot], axis=1)                 # (B, K)
    w_aug = jnp.concatenate([w.astype(jnp.float32),
                             user_emb.astype(jnp.float32)], axis=0)   # (K, N)
    K = D + U

    # Tile sizes / padding (lane-friendly multiples of 128 on K and N).
    if B > tb_max:
        tb = tb_max
        bp = _round_up(B, tb)
    else:
        bp = _round_up(B, 8)
        tb = bp
    kp = _round_up(K, 128)
    n_pad = _round_up(N, 128)
    tn = n_pad if n_pad <= tn_max else tn_max
    n_pad = _round_up(n_pad, tn)

    # bf16 matmul operands (f32 accumulation inside the kernel).
    x_p = jnp.zeros((bp, kp), jnp.bfloat16).at[:B, :K].set(
        x_aug.astype(jnp.bfloat16))
    w_p = jnp.zeros((kp, n_pad), jnp.bfloat16).at[:K, :N].set(
        w_aug.astype(jnp.bfloat16))
    y_p = jnp.zeros((bp, 1), jnp.int32).at[:B, :].set(
        y.astype(jnp.int32).reshape(B, 1))

    grid = (bp // tb, n_pad // tn)
    kernel = functools.partial(_ce_kernel, n_items=N, tn=tn,
                               inv_temp=1.0 / TEMPERATURE)

    # TODO(synk): K (feature) tiling is not implemented; W tiles are sized
    # (Kp, tn), which is fine for moderate D but would need a K grid axis +
    # accumulator for very large flattened-image dims.
    per_example_loss = pl.pallas_call(
        kernel,
        out_shape=jax.ShapeDtypeStruct((bp, 1), jnp.float32),
        grid_spec=pltpu.PrefetchScalarGridSpec(
            num_scalar_prefetch=0,
            grid=grid,
            in_specs=[
                pl.BlockSpec((tb, kp), lambda b, n: (b, 0)),
                pl.BlockSpec((kp, tn), lambda b, n: (0, n)),
                pl.BlockSpec((tb, 1), lambda b, n: (b, 0)),
            ],
            out_specs=pl.BlockSpec((tb, 1), lambda b, n: (b, 0)),
            scratch_shapes=[pltpu.VMEM((tb, 1), jnp.float32)] * 3,
        ),
        compiler_params=pltpu.CompilerParams(
            dimension_semantics=("parallel", "arbitrary"),
            # Explicit scoped-VMEM budget with headroom; safe on v7x (64 MiB).
            vmem_limit_bytes=32 * 1024 * 1024,
        ),
    )(x_p, w_p, y_p)

    # TODO(synk): the original MF_model.forward body is `pass` and the MF
    # encoder / BCEWithLogitsLoss criterion are never invoked in the snippet;
    # only this synthetic-encoder softmax-CE realization is implemented.
    return jnp.mean(per_example_loss[:B, 0])


if __name__ == "__main__":
    # Small deterministic shapes consistent with the forward pass.
    B, C, H, W = 2, 4, 16, 16
    D = C * H * W          # flattened image feature dim
    N = 32                 # num_items (logits width)
    U = 8                  # number of users

    key = jax.random.PRNGKey(0)
    k_img, k_w, k_emb, k_y, k_uid = jax.random.split(key, 5)

    img = jax.random.normal(k_img, (B, C, H, W), dtype=jnp.float32)
    user_id = jax.random.randint(k_uid, (B,), 0, U, dtype=jnp.int32)
    ignore_mask = jnp.ones((B, N), dtype=jnp.float32)
    y = jax.random.randint(k_y, (B, 1), 0, N, dtype=jnp.int32)

    # Deterministic synthetic encoder parameters (no checkpoint load).
    w_enc = jax.random.normal(k_w, (D, N), dtype=jnp.float32) * 0.02
    user_emb = jax.random.normal(k_emb, (U, N), dtype=jnp.float32) * 0.02

    loss_fn = jax.jit(mf_model_loss)
    loss = loss_fn(img, user_id, ignore_mask, y, w_enc, user_emb)
    jax.block_until_ready(loss)

    # Pure-JAX f32 reference check of the kernel math (kernel matmul is bf16,
    # so tolerance is loosened accordingly).
    logits_ref = img.reshape(B, D) @ w_enc + user_emb[user_id]
    probs_ref = jax.nn.softmax(logits_ref / TEMPERATURE, axis=1)
    pos_ref = jnp.take_along_axis(probs_ref, y, axis=1)
    loss_ref = jnp.mean(-jnp.log(pos_ref + 1e-9))
    assert jnp.allclose(loss, loss_ref, rtol=5e-2, atol=5e-2), (loss, loss_ref)

    print("KERNEL_OK")
</pallas_src>

<mosaic_0001>
module attributes {stable_mosaic.version = 11 : i64} {
  func.func @_ce_kernel(%arg0: i32, %arg1: i32, %arg2: memref<8x1152xbf16, #tpu.memory_space<vmem>>, %arg3: memref<1152x128xbf16, #tpu.memory_space<vmem>>, %arg4: memref<8x1xi32, #tpu.memory_space<vmem>>, %arg5: memref<8x1xf32, #tpu.memory_space<vmem>>, %arg6: memref<8x1xf32, #tpu.memory_space<vmem>>, %arg7: memref<8x1xf32, #tpu.memory_space<vmem>>, %arg8: memref<8x1xf32, #tpu.memory_space<vmem>>) attributes {dimension_semantics = [#tpu.dimension_semantics<parallel>, #tpu.dimension_semantics<arbitrary>], iteration_bounds = array<i64: 1, 1>, scalar_prefetch = 0 : i64, scratch_operands = 3 : i64, tpu.core_type = #tpu.core_type<tc>, window_params = [{transform_indices = @transform_0, window_bounds = array<i64: 8, 1152>}, {transform_indices = @transform_1, window_bounds = array<i64: 1152, 128>}, {transform_indices = @transform_2, window_bounds = array<i64: 8, 1>}, {transform_indices = @transform_3, window_bounds = array<i64: 8, 1>}]} {
    %c0_i32 = arith.constant 0 : i32
    %0 = arith.cmpi eq, %arg1, %c0_i32 : i32
    %1 = arith.extui %0 : i1 to i32
    %c0_i32_0 = arith.constant 0 : i32
    %2 = arith.cmpi ne, %1, %c0_i32_0 : i32
    scf.if %2 {
      %cst_28 = arith.constant 0xFF800000 : f32
      %46 = vector.broadcast %cst_28 : f32 to vector<8x1xf32>
      %c0_29 = arith.constant 0 : index
      %c0_30 = arith.constant 0 : index
      %47 = vector.load %arg6[%c0_29, %c0_30] : memref<8x1xf32, #tpu.memory_space<vmem>>, vector<8x1xf32>
      tpu.vector_store %arg6[%c0_29, %c0_30], %46 {strides = array<i32>} : memref<8x1xf32, #tpu.memory_space<vmem>>, vector<8x1xf32>,
      %cst_31 = arith.constant 0.000000e+00 : f32
      %48 = vector.broadcast %cst_31 : f32 to vector<8x1xf32>
      %c0_32 = arith.constant 0 : index
      %c0_33 = arith.constant 0 : index
      %49 = vector.load %arg7[%c0_32, %c0_33] : memref<8x1xf32, #tpu.memory_space<vmem>>, vector<8x1xf32>
      tpu.vector_store %arg7[%c0_32, %c0_33], %48 {strides = array<i32>} : memref<8x1xf32, #tpu.memory_space<vmem>>, vector<8x1xf32>,
      %cst_34 = arith.constant 0.000000e+00 : f32
      %50 = vector.broadcast %cst_34 : f32 to vector<8x1xf32>
      %c0_35 = arith.constant 0 : index
      %c0_36 = arith.constant 0 : index
      %51 = vector.load %arg8[%c0_35, %c0_36] : memref<8x1xf32, #tpu.memory_space<vmem>>, vector<8x1xf32>
      tpu.vector_store %arg8[%c0_35, %c0_36], %50 {strides = array<i32>} : memref<8x1xf32, #tpu.memory_space<vmem>>, vector<8x1xf32>,
    } else {
    }
    %c0 = arith.constant 0 : index
    %c0_1 = arith.constant 0 : index
    %3 = vector.load %arg2[%c0, %c0_1] : memref<8x1152xbf16, #tpu.memory_space<vmem>>, vector<8x1152xbf16>
    %c0_2 = arith.constant 0 : index
    %c0_3 = arith.constant 0 : index
    %4 = vector.load %arg3[%c0_2, %c0_3] : memref<1152x128xbf16, #tpu.memory_space<vmem>>, vector<1152x128xbf16>
    %cst = arith.constant dense<0.000000e+00> : vector<8x128xf32>
    %5 = tpu.matmul %3, %4, %cst {dimension_numbers = #tpu.dot_dimension_numbers<[1], [0], [0], [1], [0, 0, 1, 1], [], []>} : vector<8x1152xbf16>, vector<1152x128xbf16>, vector<8x128xf32> -> vector<8x128xf32>
    %cst_4 = arith.constant 1.000000e+01 : f32
    %6 = vector.broadcast %cst_4 : f32 to vector<8x128xf32>
    %7 = arith.mulf %5, %6 : vector<8x128xf32>
    %c128_i32 = arith.constant 128 : i32
    %8 = arith.muli %arg1, %c128_i32 : i32
    %9 = tpu.iota {dimensions = array<i32: 1>} : vector<8x128xi32>
    %10 = vector.broadcast %8 : i32 to vector<8x128xi32>
    %11 = arith.addi %10, %9 : vector<8x128xi32>
    %c32_i32 = arith.constant 32 : i32
    %12 = vector.broadcast %c32_i32 : i32 to vector<8x128xi32>
    %13 = arith.cmpi slt, %11, %12 : vector<8x128xi32>
    %c0_5 = arith.constant 0 : index
    %c0_6 = arith.constant 0 : index
    %14 = vector.load %arg8[%c0_5, %c0_6] : memref<8x1xf32, #tpu.memory_space<vmem>>, vector<8x1xf32>
    %c0_7 = arith.constant 0 : index
    %c0_8 = arith.constant 0 : index
    %15 = vector.load %arg4[%c0_7, %c0_8] : memref<8x1xi32, #tpu.memory_space<vmem>>, vector<8x1xi32>
    %16 = vector.broadcast %15 : vector<8x1xi32> to vector<8x128xi32>
    %17 = arith.cmpi eq, %11, %16 : vector<8x128xi32>
    %cst_9 = arith.constant 0.000000e+00 : f32
    %18 = vector.broadcast %cst_9 : f32 to vector<8x128xf32>
    %19 = arith.select %17, %7, %18 : vector<8x128xi1>, vector<8x128xf32>
    %cst_10 = arith.constant dense<0.000000e+00> : vector<8xf32>
    %20 = vector.multi_reduction <add>, %19, %cst_10 [1] : vector<8x128xf32> to vector<8xf32>
    %21 = vector.shape_cast %20 : vector<8xf32> to vector<8x1xf32>
    %22 = arith.addf %14, %21 : vector<8x1xf32>
    %c0_11 = arith.constant 0 : index
    %c0_12 = arith.constant 0 : index
    %23 = vector.load %arg8[%c0_11, %c0_12] : memref<8x1xf32, #tpu.memory_space<vmem>>, vector<8x1xf32>
    tpu.vector_store %arg8[%c0_11, %c0_12], %22 {strides = array<i32>} : memref<8x1xf32, #tpu.memory_space<vmem>>, vector<8x1xf32>,
    %cst_13 = arith.constant 0xFF800000 : f32
    %24 = vector.broadcast %cst_13 : f32 to vector<8x128xf32>
    %25 = arith.select %13, %7, %24 : vector<8x128xi1>, vector<8x128xf32>
    %c0_14 = arith.constant 0 : index
    %c0_15 = arith.constant 0 : index
    %26 = vector.load %arg6[%c0_14, %c0_15] : memref<8x1xf32, #tpu.memory_space<vmem>>, vector<8x1xf32>
    %cst_16 = arith.constant dense<0xFF800000> : vector<8xf32>
    %27 = vector.multi_reduction <maximumf>, %25, %cst_16 [1] : vector<8x128xf32> to vector<8xf32>
    %28 = vector.shape_cast %27 : vector<8xf32> to vector<8x1xf32>
    %29 = arith.maximumf %26, %28 : vector<8x1xf32>
    %c0_17 = arith.constant 0 : index
    %c0_18 = arith.constant 0 : index
    %30 = vector.load %arg6[%c0_17, %c0_18] : memref<8x1xf32, #tpu.memory_space<vmem>>, vector<8x1xf32>
    %31 = arith.subf %30, %29 : vector<8x1xf32>
    %32 = math.exp %31 : vector<8x1xf32>
    %33 = vector.broadcast %29 : vector<8x1xf32> to vector<8x128xf32>
    %34 = arith.subf %25, %33 : vector<8x128xf32>
    %35 = math.exp %34 : vector<8x128xf32>
    %c0_19 = arith.constant 0 : index
    %c0_20 = arith.constant 0 : index
    %36 = vector.load %arg7[%c0_19, %c0_20] : memref<8x1xf32, #tpu.memory_space<vmem>>, vector<8x1xf32>
    %37 = arith.mulf %32, %36 : vector<8x1xf32>
    %cst_21 = arith.constant dense<0.000000e+00> : vector<8xf32>
    %38 = vector.multi_reduction <add>, %35, %cst_21 [1] : vector<8x128xf32> to vector<8xf32>
    %39 = vector.shape_cast %38 : vector<8xf32> to vector<8x1xf32>
    %40 = arith.addf %37, %39 : vector<8x1xf32>
    %c0_22 = arith.constant 0 : index
    %c0_23 = arith.constant 0 : index
    %41 = vector.load %arg7[%c0_22, %c0_23] : memref<8x1xf32, #tpu.memory_space<vmem>>, vector<8x1xf32>
    tpu.vector_store %arg7[%c0_22, %c0_23], %40 {strides = array<i32>} : memref<8x1xf32, #tpu.memory_space<vmem>>, vector<8x1xf32>,
    %c0_24 = arith.constant 0 : index
    %c0_25 = arith.constant 0 : index
    %42 = vector.load %arg6[%c0_24, %c0_25] : memref<8x1xf32, #tpu.memory_space<vmem>>, vector<8x1xf32>
    tpu.vector_store %arg6[%c0_24, %c0_25], %29 {strides = array<i32>} : memref<8x1xf32, #tpu.memory_space<vmem>>, vector<8x1xf32>,
    %c0_i32_26 = arith.constant 0 : i32
    %43 = arith.cmpi eq, %arg1, %c0_i32_26 : i32
    %44 = arith.extui %43 : i1 to i32
    %c0_i32_27 = arith.constant 0 : i32
    %45 = arith.cmpi ne, %44, %c0_i32_27 : i32
    scf.if %45 {
      %c0_28 = arith.constant 0 : index
      %c0_29 = arith.constant 0 : index
      %46 = vector.load %arg8[%c0_28, %c0_29] : memref<8x1xf32, #tpu.memory_space<vmem>>, vector<8x1xf32>
      %c0_30 = arith.constant 0 : index
      %c0_31 = arith.constant 0 : index
      %47 = vector.load %arg6[%c0_30, %c0_31] : memref<8x1xf32, #tpu.memory_space<vmem>>, vector<8x1xf32>
      %48 = arith.subf %46, %47 : vector<8x1xf32>
      %49 = math.exp %48 : vector<8x1xf32>
      %c0_32 = arith.constant 0 : index
      %c0_33 = arith.constant 0 : index
      %50 = vector.load %arg7[%c0_32, %c0_33] : memref<8x1xf32, #tpu.memory_space<vmem>>, vector<8x1xf32>
      %51 = tpu.reciprocal %50 {approx = true} : vector<8x1xf32> -> vector<8x1xf32>
      %52 = arith.mulf %49, %51 : vector<8x1xf32>
      %cst_34 = arith.constant 9.99999971E-10 : f32
      %53 = vector.broadcast %cst_34 : f32 to vector<8x1xf32>
      %54 = arith.addf %52, %53 : vector<8x1xf32>
      %55 = math.log %54 : vector<8x1xf32>
      %cst_35 = arith.constant 0.000000e+00 : f32
      %56 = vector.broadcast %cst_35 : f32 to vector<8x1xf32>
      %57 = arith.subf %56, %55 : vector<8x1xf32>
      %c0_36 = arith.constant 0 : index
      %c0_37 = arith.constant 0 : index
      %58 = vector.load %arg5[%c0_36, %c0_37] : memref<8x1xf32, #tpu.memory_space<vmem>>, vector<8x1xf32>
      tpu.vector_store %arg5[%c0_36, %c0_37], %57 {strides = array<i32>} : memref<8x1xf32, #tpu.memory_space<vmem>>, vector<8x1xf32>,
    } else {
    }
    return
  }
  func.func @transform_0(%arg0: i32, %arg1: i32) -> (i32, i32) {
    %c0_i32 = arith.constant 0 : i32
    %c0_i32_0 = arith.constant 0 : i32
    return %arg0, %c0_i32 : i32, i32
  }
  func.func @transform_1(%arg0: i32, %arg1: i32) -> (i32, i32) {
    %c0_i32 = arith.constant 0 : i32
    %c0_i32_0 = arith.constant 0 : i32
    return %c0_i32, %arg1 : i32, i32
  }
  func.func @transform_2(%arg0: i32, %arg1: i32) -> (i32, i32) {
    %c0_i32 = arith.constant 0 : i32
    %c0_i32_0 = arith.constant 0 : i32
    return %arg0, %c0_i32 : i32, i32
  }
  func.func @transform_3(%arg0: i32, %arg1: i32) -> (i32, i32) {
    %c0_i32 = arith.constant 0 : i32
    %c0_i32_0 = arith.constant 0 : i32
    return %arg0, %c0_i32 : i32, i32
  }
}

</mosaic_0001>

<bundles_post_ra>
// kernel: mf_model_loss.1
= control target key start
LH: loop header
LB: loop body
LE: loop exit
PB: predicated region body
PF: predicated region fallthrough
CT: control target
= control target key end

     0   :  { %v1193_v1 = vmov 0   ;;  %vm1195_vm0 = vmmov 0   ;;  %vm19_vm1 = vcmask 7168   ;;  %s1461_s1 = inlined_call_operand.vmem [shape: bf16[1152,128], index: 1, kind: input, shape index: {}]   ;;  %s1462_s0 = inlined_call_operand.vmem [shape: bf16[8,1152], index: 0, kind: input, shape index: {}]   ;;  %s1463_s2 = inlined_call_operand.vmem [shape: s32[8,1], index: 2, kind: input, shape index: {}]   ;;  %s1464_s3 = inlined_call_operand.vmem [shape: f32[8,1], index: 3, kind: output, shape index: {}]  }
   0x1   :  { %v1102_v0 = vld [vmem:[%s1461_s1 + $0x78] sm:$0xff]   ;;  %1101 = vset.pattern.permute.xlu1 %v1193_v1  ;;  %1100 = vset.pattern.permute.xlu0 %v1193_v1  ;;  %v1106_v5 = vld [vmem:[%s1461_s1 + $0x70] sm:$0xff]   ;;  %v1110_v9 = vld [vmem:[%s1461_s1 + $0x68] sm:$0xff]  }
   0x2   :  { %v1103_v2 = vld [vmem:[%s1461_s1 + $0xf8] sm:$0xff]   ;;  %979 = vmatprep.subr.bf16.mxu0 %v1102_v0  ;;  %v1107_v6 = vld [vmem:[%s1461_s1 + $0xf0] sm:$0xff]   ;;  %v1111_v10 = vld [vmem:[%s1461_s1 + $0xe8] sm:$0xff]  }
   0x3   :  { %v1104_v3 = vld [vmem:[%s1461_s1 + $0x38] sm:$0xff]   ;;  %1001 = vmatprep.subr.bf16.mxu1 %v1103_v2  ;;  %v1108_v7 = vld [vmem:[%s1461_s1 + $0x30] sm:$0xff]   ;;  %v1112_v11 = vld [vmem:[%s1461_s1 + $0x28] sm:$0xff]  }
   0x4   :  { %v1105_v4 = vld [vmem:[%s1461_s1 + $0xb8] sm:$0xff]   ;;  %980 = vmatpush3.bf16.msra.mxu0 %v1104_v3  ;;  %v1109_v8 = vld [vmem:[%s1461_s1 + $0xb0] sm:$0xff]   ;;  %v1113_v12 = vld [vmem:[%s1461_s1 + $0xa8] sm:$0xff]  }
   0x5   :  { %1002 = vmatpush3.bf16.msra.mxu1 %v1105_v4  ;;  %981 = vmatprep.subr.bf16.mxu0 %v1106_v5  ;;  %v1114_v13 = vld [vmem:[%s1461_s1 + $0x60] sm:$0xff]   ;;  %v1118_v17 = vld [vmem:[%s1461_s1 + $0x58] sm:$0xff]   ;;  %v1122_v21 = vld [vmem:[%s1461_s1 + $0x50] sm:$0xff]  }
   0x6   :  { %1003 = vmatprep.subr.bf16.mxu1 %v1107_v6  ;;  %v1115_v14 = vld [vmem:[%s1461_s1 + $0xe0] sm:$0xff]   ;;  %v1119_v18 = vld [vmem:[%s1461_s1 + $0xd8] sm:$0xff]   ;;  %v1123_v22 = vld [vmem:[%s1461_s1 + $0xd0] sm:$0xff]  }
   0x7   :  { %v1116_v15 = vld [vmem:[%s1461_s1 + $0x20] sm:$0xff]   ;;  %v1120_v19 = vld [vmem:[%s1461_s1 + $0x18] sm:$0xff]   ;;  %v1124_v23 = vld [vmem:[%s1461_s1 + $0x10] sm:$0xff]  }
   0x8   :  { %982 = vmatpush3.bf16.msra.mxu0 %v1108_v7  ;;  %v1117_v16 = vld [vmem:[%s1461_s1 + $0xa0] sm:$0xff]   ;;  %v1121_v20 = vld [vmem:[%s1461_s1 + $0x98] sm:$0xff]   ;;  %v1125_v24 = vld [vmem:[%s1461_s1 + $0x90] sm:$0xff]  }
   0x9   :  { %1004 = vmatpush3.bf16.msra.mxu1 %v1109_v8  ;;  %983 = vmatprep.subr.bf16.mxu0 %v1110_v9  ;;  %v1126_v25 = vld [vmem:[%s1461_s1 + $0x48] sm:$0xff]   ;;  %v1130_v29 = vld [vmem:[%s1461_s1 + $0x40] sm:$0xff]   ;;  %v1138_v39 = vld [vmem:[%s1461_s1 + $0x178] sm:$0xff]  }
   0xa   :  { %1005 = vmatprep.subr.bf16.mxu1 %v1111_v10  ;;  %v1127_v26 = vld [vmem:[%s1461_s1 + $0xc8] sm:$0xff]   ;;  %v1131_v30 = vld [vmem:[%s1461_s1 + $0xc0] sm:$0xff]   ;;  %v1139_v40 = vld [vmem:[%s1461_s1 + $0x138] sm:$0xff]  }
   0xb   :  { %v1128_v27 = vld [vmem:[%s1461_s1 + $0x8] sm:$0xff]   ;;  %v1132_v31 = vld [vmem:[%s1461_s1] sm:$0xff]   ;;  %v1140_v41 = vld [vmem:[%s1461_s1 + $0x1f8] sm:$0xff]  }
   0xc   :  { %984 = vmatpush3.bf16.msra.mxu0 %v1112_v11  ;;  %v1129_v28 = vld [vmem:[%s1461_s1 + $0x88] sm:$0xff]   ;;  %v1133_v32 = vld [vmem:[%s1461_s1 + $0x80] sm:$0xff]   ;;  %v1141_v42 = vld [vmem:[%s1461_s1 + $0x1b8] sm:$0xff]  }
   0xd   :  { %1006 = vmatpush3.bf16.msra.mxu1 %v1113_v12  ;;  %985 = vmatprep.subr.bf16.mxu0 %v1114_v13  ;;  %v23_v33 = vld [vmem:[%s1462_s0] sm:$0xff]  ;;  %v24_v34 = vld [vmem:[%s1462_s0 + $0x8] sm:$0xff]  ;;  %v1142_v43 = vld [vmem:[%s1461_s1 + $0x170] sm:$0xff]  }
   0xe   :  { %1007 = vmatprep.subr.bf16.mxu1 %v1115_v14  ;;  %v898_v35 = vcombine.low %v23_v33, %v23_v33  ;;  %v899_v36 = vcombine.high %v23_v33, %v23_v33  ;;  %v900_v37 = vcombine.low %v24_v34, %v24_v34  ;;  %v901_v38 = vcombine.high %v24_v34, %v24_v34  ;;  %v1143_v44 = vld [vmem:[%s1461_s1 + $0x130] sm:$0xff]   ;;  %v1146_v47 = vld [vmem:[%s1461_s1 + $0x168] sm:$0xff]   ;;  %v1150_v51 = vld [vmem:[%s1461_s1 + $0x160] sm:$0xff]  }
   0xf   :  { %v1144_v45 = vld [vmem:[%s1461_s1 + $0x1f0] sm:$0xff]   ;;  %v1147_v48 = vld [vmem:[%s1461_s1 + $0x128] sm:$0xff]   ;;  %v1151_v52 = vld [vmem:[%s1461_s1 + $0x120] sm:$0xff]   ;;  %v1194_v14 = vmov 0.0  }
  0x10   :  { %986 = vmatpush3.bf16.msra.mxu0 %v1116_v15  ;;  %668 = vmatprep.mubr.bf16.mxu0 %v899_v36  ;;  %v1145_v46 = vld [vmem:[%s1461_s1 + $0x1b0] sm:$0xff]   ;;  %v1148_v49 = vld [vmem:[%s1461_s1 + $0x1e8] sm:$0xff]   ;;  %v1152_v53 = vld [vmem:[%s1461_s1 + $0x1e0] sm:$0xff]   ;;  %21 = vst.msk [vmem:[#allocation3] sm:$0xff] %vm19_vm1, %v1194_v14 }
  0x11   :  { %1008 = vmatpush3.bf16.msra.mxu1 %v1117_v16  ;;  %987 = vmatprep.subr.bf16.mxu0 %v1118_v17  ;;  %v1149_v50 = vld [vmem:[%s1461_s1 + $0x1a8] sm:$0xff]   ;;  %v1153_v54 = vld [vmem:[%s1461_s1 + $0x1a0] sm:$0xff]   ;;  %v1154_v55 = vld [vmem:[%s1461_s1 + $0x158] sm:$0xff]   ;;  %22 = vst.msk [vmem:[#allocation4] sm:$0xff] %vm19_vm1, %v1194_v14 }
  0x12   :  { %1009 = vmatprep.subr.bf16.mxu1 %v1119_v18  ;;  %708 = vmatprep.mubr.bf16.mxu1 %v901_v38  ;;  %v1155_v56 = vld [vmem:[%s1461_s1 + $0x118] sm:$0xff]   ;;  %v1158_v59 = vld [vmem:[%s1461_s1 + $0x150] sm:$0xff]   ;;  %v1162_v63 = vld [vmem:[%s1461_s1 + $0x148] sm:$0xff]  }
  0x13   :  { %v1156_v57 = vld [vmem:[%s1461_s1 + $0x1d8] sm:$0xff]   ;;  %v1159_v60 = vld [vmem:[%s1461_s1 + $0x110] sm:$0xff]   ;;  %v1163_v0 = vld [vmem:[%s1461_s1 + $0x108] sm:$0xff]  }
  0x14   :  { %988 = vmatpush3.bf16.msra.mxu0 %v1120_v19  ;;  %v1157_v58 = vld [vmem:[%s1461_s1 + $0x198] sm:$0xff]   ;;  %v1160_v61 = vld [vmem:[%s1461_s1 + $0x1d0] sm:$0xff]   ;;  %v1164_v1 = vld [vmem:[%s1461_s1 + $0x1c8] sm:$0xff]  }
  0x15   :  { %1010 = vmatpush3.bf16.msra.mxu1 %v1121_v20  ;;  %989 = vmatprep.subr.bf16.mxu0 %v1122_v21  ;;  %v1161_v62 = vld [vmem:[%s1461_s1 + $0x190] sm:$0xff]   ;;  %v1165_v2 = vld [vmem:[%s1461_s1 + $0x188] sm:$0xff]   ;;  %v1166_v3 = vld [vmem:[%s1461_s1 + $0x140] sm:$0xff]  }
  0x16   :  { %1011 = vmatprep.subr.bf16.mxu1 %v1123_v22  ;;  %v1167_v4 = vld [vmem:[%s1461_s1 + $0x100] sm:$0xff]   ;;  %v25_v6 = vld [vmem:[%s1462_s0 + $0x10] sm:$0xff]  ;;  %v26_v10 = vld [vmem:[%s1462_s0 + $0x18] sm:$0xff] }
  0x17   :  { %v1168_v5 = vld [vmem:[%s1461_s1 + $0x1c0] sm:$0xff]   ;;  %v903_v7 = vcombine.high %v25_v6, %v25_v6  ;;  %v902_v9 = vcombine.low %v25_v6, %v25_v6  ;;  %v904_v11 = vcombine.low %v26_v10, %v26_v10  ;;  %v905_v12 = vcombine.high %v26_v10, %v26_v10  ;;  %v1174_v13 = vld [vmem:[%s1461_s1 + $0x238] sm:$0xff]   ;;  %v1175_v15 = vld [vmem:[%s1461_s1 + $0x230] sm:$0xff]  }
  0x18   :  { %990 = vmatpush3.bf16.msra.mxu0 %v1124_v23  ;;  %v1171_v8 = vld [vmem:[%s1461_s1 + $0x180] sm:$0xff]   ;;  %v1176_v16 = vld [vmem:[%s1461_s1 + $0x228] sm:$0xff]   ;;  %v1178_v19 = vld [vmem:[%s1461_s1 + $0x218] sm:$0xff]  }
  0x19   :  { %1012 = vmatpush3.bf16.msra.mxu1 %v1125_v24  ;;  %991 = vmatprep.subr.bf16.mxu0 %v1126_v25  ;;  %v844_v17 = vld [vmem:[%s1463_s2] sm:$0xff]  ;;  %v1179_v20 = vld [vmem:[%s1461_s1 + $0x210] sm:$0xff]   ;;  %v1180_v21 = vld [vmem:[%s1461_s1 + $0x208] sm:$0xff]   ;;  %v1196_v24 = vmov -inf  }
  0x1a   :  { %1013 = vmatprep.subr.bf16.mxu1 %v1127_v26  ;;  %846 = vperm.xlu1 %1101, %v844_v17   ;;  %v1177_v18 = vld [vmem:[%s1461_s1 + $0x220] sm:$0xff]   ;;  %20 = vst.msk [vmem:[#allocation2] sm:$0xff] %vm19_vm1, %v1196_v24 }
  0x1b   :  { %v1181_v22 = vld [vmem:[%s1461_s1 + $0x200] sm:$0xff]  }
  0x1c   :  { %992 = vmatpush3.bf16.msra.mxu0 %v1128_v27  ;;  %v1182_v23 = vld [vmem:[%s1462_s0 + $0x20] ss:$0 sps:$4 sm:$0xff]  }
  0x1d   :  { %1014 = vmatpush3.bf16.msra.mxu1 %v1129_v28  ;;  %993 = vmatprep.subr.bf16.mxu0 %v1130_v29 }
  0x1e   :  { %1015 = vmatprep.subr.bf16.mxu1 %v1131_v30 }
  0x20   :  { %994 = vmatpush3.bf16.msra.mxu0 %v1132_v31 }
  0x21   :  { %1016 = vmatpush3.bf16.msra.mxu1 %v1133_v32  ;;  %1023 = vmatprep.subr.bf16.mxu0 %v1138_v39 }
  0x22   :  { %1045 = vmatprep.subr.bf16.mxu1 %v1140_v41 }
  0x23   :  { %669 = vmatmul.mubr.bf16.vlgmr.msra.gmra.mxu0 %v898_v35 }
  0x24   :  { %709 = vmatmul.mubr.bf16.vlgmr.msra.gmra.mxu1 %v900_v37  ;;  %1024 = vmatpush3.bf16.msra.mxu0 %v1139_v40 }
  0x25   :  { %1046 = vmatpush3.bf16.msra.mxu1 %v1141_v42  ;;  %1025 = vmatprep.subr.bf16.mxu0 %v1142_v43 }
  0x26   :  { %1047 = vmatprep.subr.bf16.mxu1 %v1144_v45  ;;  %748 = vmatprep.mubr.bf16.mxu0 %v903_v7  ;;  %v838_v45 = vlaneseq }
  0x27   :  { %788 = vmatprep.mubr.bf16.mxu1 %v905_v12 }
  0x28   :  { %1026 = vmatpush3.bf16.msra.mxu0 %v1143_v44 }
  0x29   :  { %1048 = vmatpush3.bf16.msra.mxu1 %v1145_v46  ;;  %1027 = vmatprep.subr.bf16.mxu0 %v1146_v47 }
  0x2a   :  { %1049 = vmatprep.subr.bf16.mxu1 %v1148_v49 }
  0x2c   :  { %1028 = vmatpush3.bf16.msra.mxu0 %v1147_v48  ;;  %v839_v48 = vand.u32 127, %v838_v45 }
  0x2d   :  { %1050 = vmatpush3.bf16.msra.mxu1 %v1149_v50  ;;  %1029 = vmatprep.subr.bf16.mxu0 %v1150_v51 }
  0x2e   :  { %1051 = vmatprep.subr.bf16.mxu1 %v1152_v53  ;;  %vm842_vm3 = vcmp.lt.s32.totalorder %v839_v48, 32 }
  0x30   :  { %1030 = vmatpush3.bf16.msra.mxu0 %v1151_v52 }
  0x31   :  { %1052 = vmatpush3.bf16.msra.mxu1 %v1153_v54  ;;  %1031 = vmatprep.subr.bf16.mxu0 %v1154_v55 }
  0x32   :  { %1053 = vmatprep.subr.bf16.mxu1 %v1156_v57 }
  0x34   :  { %1032 = vmatpush3.bf16.msra.mxu0 %v1155_v56 }
  0x35   :  { %1054 = vmatpush3.bf16.msra.mxu1 %v1157_v58  ;;  %1033 = vmatprep.subr.bf16.mxu0 %v1158_v59  ;;  %v856_v59 = vld [vmem:[#allocation2] sm:$0xff] }
  0x36   :  { %1055 = vmatprep.subr.bf16.mxu1 %v1160_v61 }
  0x38   :  { %1034 = vmatpush3.bf16.msra.mxu0 %v1159_v60  ;;  %v843_v60 = vld [vmem:[#allocation4] sm:$0xff] }
  0x39   :  { %1056 = vmatpush3.bf16.msra.mxu1 %v1161_v62  ;;  %1035 = vmatprep.subr.bf16.mxu0 %v1162_v63 }
  0x3a   :  { %1057 = vmatprep.subr.bf16.mxu1 %v1164_v1 }
  0x3c   :  { %1036 = vmatpush3.bf16.msra.mxu0 %v1163_v0 }
  0x3d   :  { %1058 = vmatpush3.bf16.msra.mxu1 %v1165_v2  ;;  %1037 = vmatprep.subr.bf16.mxu0 %v1166_v3 }
  0x3e   :  { %1059 = vmatprep.subr.bf16.mxu1 %v1168_v5 }
  0x40   :  { %1038 = vmatpush3.bf16.msra.mxu0 %v1167_v4 }
  0x41   :  { %1060 = vmatpush3.bf16.msra.mxu1 %v1171_v8  ;;  %1076 = vmatprep.subr.bf16.mxu0 %v1194_v14  ;;  %v871_v8 = vld [vmem:[#allocation3] sm:$0xff] }
  0x43   :  { %749 = vmatmul.mubr.bf16.vlgmr.msra.gmra.mxu0 %v902_v9 }
  0x44   :  { %1077 = vmatpush3.bf16.msra.mxu0 %v1174_v13  ;;  %789 = vmatmul.mubr.bf16.vlgmr.msra.gmra.mxu1 %v904_v11 }
  0x45   :  { %1078 = vmatprep.subr.bf16.mxu0 %v1194_v14  ;;  %1092 = vmatprep.mubr.msk.bf16.mxu0 %vm1195_vm0, %v1194_v14 }
  0x48   :  { %1079 = vmatpush3.bf16.msra.mxu0 %v1175_v15 }
  0x49   :  { %1080 = vmatprep.subr.bf16.mxu0 %v1194_v14 }
  0x4c   :  { %1081 = vmatpush3.bf16.msra.mxu0 %v1176_v16 }
  0x4d   :  { %1082 = vmatprep.subr.bf16.mxu0 %v1194_v14 }
  0x50   :  { %1083 = vmatpush3.bf16.msra.mxu0 %v1177_v18 }
  0x51   :  { %1084 = vmatprep.subr.bf16.mxu0 %v1194_v14 }
  0x54   :  { %1085 = vmatpush3.bf16.msra.mxu0 %v1178_v19 }
  0x55   :  { %1086 = vmatprep.subr.bf16.mxu0 %v1194_v14 }
  0x58   :  { %1087 = vmatpush3.bf16.msra.mxu0 %v1179_v20 }
  0x59   :  { %1088 = vmatprep.subr.bf16.mxu0 %v1194_v14 }
  0x5c   :  { %1089 = vmatpush3.bf16.msra.mxu0 %v1180_v21 }
  0x5d   :  { %1090 = vmatprep.subr.bf16.mxu0 %v1194_v14 }
  0x60   :  { %1091 = vmatpush3.bf16.msra.mxu0 %v1181_v22 }
  0x63   :  { %1093 = vmatmul.mubr.bf16.vlgmr.msra.gmra.mxu0 %v1182_v23 }
  0x95   :  { %v847_v50 = vpop.permute.xlu1 %846 }
  0x96   :  { %vm848_vm2 = vcmp.eq.s32.totalorder %v839_v48, %v847_v50 }
  0xe3   :  { %v995_v25 = vpop.f32.mrf.mxu0 }
  0xe4   :  { %v1017_v26 = vpop.f32.mrf.mxu1 }
  0xe5   :  { %v996_v27 = vpop.f32.mrf.mxu0 }
  0xe6   :  { %v1018_v28 = vpop.f32.mrf.mxu1  ;;  %v997_v41 = vadd.f32 %v996_v27, %v995_v25 }
  0xe7   :  { %v998_v29 = vpop.f32.mrf.mxu0  ;;  %v1019_v42 = vadd.f32 %v1018_v28, %v1017_v26 }
  0xe8   :  { %v1020_v30 = vpop.f32.mrf.mxu1 }
  0xe9   :  { %v999_v31 = vpop.f32.mrf.mxu0  ;;  %v711_v44 = vadd.f32 %v1019_v42, %v997_v41 }
  0xea   :  { %v1021_v32 = vpop.f32.mrf.mxu1 }
 0x103   :  { %v1039_v33 = vpop.f32.mrf.mxu0 }
 0x104   :  { %v1061_v34 = vpop.f32.mrf.mxu1 }
 0x105   :  { %v1040_v35 = vpop.f32.mrf.mxu0 }
 0x106   :  { %v1062_v36 = vpop.f32.mrf.mxu1  ;;  %v1041_v43 = vadd.f32 %v1040_v35, %v1039_v33 }
 0x107   :  { %v1042_v37 = vpop.f32.mrf.mxu0  ;;  %v1063_v47 = vadd.f32 %v1062_v36, %v1061_v34 }
 0x108   :  { %v1064_v38 = vpop.f32.mrf.mxu1  ;;  %v751_v46 = vadd.f32 %v1041_v43, %v711_v44 }
 0x109   :  { %v1043_v39 = vpop.f32.mrf.mxu0 }
 0x10a   :  { %v1065_v40 = vpop.f32.mrf.mxu1  ;;  %v791_v49 = vadd.f32 %v1063_v47, %v751_v46 }
 0x123   :  { %v830_v51 = vpop.f32.mrf.mxu0 }
 0x124   :  { %v831_v52 = vadd.f32 %v830_v51, %v791_v49 }
 0x125   :  { %v1094_v53 = vpop.f32.mrf.mxu0 }
 0x126   :  { %v836_v54 = vmul.f32 10.0, %v831_v52 }
 0x127   :  { %v833_v55 = vpop.f32.mrf.mxu0 }
 0x128   :  { %v855_v56 = vsel %vm842_vm3, %v836_v54, -inf  ;;  %v849_v57 = vsel %vm848_vm2, %v836_v54, 0.0 }
 0x129   :  { %v1095_v58 = vpop.f32.mrf.mxu0  ;;  %857 = vmax.xlane.f32.xlu0 %v855_v56  ;;  %850 = vadd.xlane.f32.xlu1 %v849_v57 }
 0x1b2   :  { %v858_v61 = vpop.xlane.xlu0 %857  ;;  %v851_v62 = vpop.xlane.xlu1 %850 }
 0x1b3   :  { %v859_v63 = vmax.f32 %v856_v59, %v858_v61  ;;  %v852_v0 = vadd.f32 %v851_v62, %v843_v60 }
 0x1b5   :  { %v860_v1 = vsub.f32 %v856_v59, %v859_v63  ;;  %877 = vst.msk [vmem:[#allocation2] sm:$0xff] %vm19_vm1, %v859_v63  ;;  %854 = vst.msk [vmem:[#allocation4] sm:$0xff] %vm19_vm1, %v852_v0  ;;  %865 = vperm.xlu0 %1100, %v859_v63  }
 0x1b7   :  { %v861_v6 = vmul.f32 1.442695, %v860_v1 }
 0x1bc   :  { %v882_v9 = vld [vmem:[#allocation2] sm:$0xff]  ;;  %v881_v10 = vld [vmem:[#allocation4] sm:$0xff] }
 0x1bd   :  { %v883_v14 = vsub.f32 %v881_v10, %v882_v9 }
 0x1bf   :  { %v884_v15 = vmul.f32 1.442695, %v883_v14 }
 0x230   :  { %v866_v2 = vpop.permute.xlu0 %865 }
 0x231   :  { %v868_v3 = vsub.f32 %v855_v56, %v866_v2 }
 0x233   :  { %v869_v4 = vmul.f32 1.442695, %v868_v3 }
 0x235   :  { %1183 = vpow2.f32 %v869_v4 }
 0x236   :  { %1185 = vpow2.f32 %v861_v6 }
 0x237   :  { %1187 = vpow2.f32 %v884_v15 }
 0x242   :  { %v1184_v5 = vpop.eup %1183 }
 0x243   :  { %873 = vadd.xlane.f32.xlu1 %v1184_v5  ;;  %v1186_v7 = vpop.eup %1185 }
 0x244   :  { %v872_v11 = vmul.f32 %v1186_v7, %v871_v8  ;;  %v1188_v17 = vpop.eup %1187 }
 0x2cc   :  { %v874_v12 = vpop.xlane.xlu1 %873 }
 0x2cd   :  { %v875_v13 = vadd.f32 %v874_v12, %v872_v11 }
 0x2cf   :  { %876 = vst.msk [vmem:[#allocation3] sm:$0xff] %vm19_vm1, %v875_v13 }
 0x2d6   :  { %v886_v16 = vld [vmem:[#allocation3] sm:$0xff] }
 0x2d7   :  { %1189 = vrcp.f32 %v886_v16 }
 0x2e4   :  { %v1190_v18 = vpop.eup %1189 }
 0x2e5   :  { %v888_v19 = vmul.f32 %v1190_v18, %v1188_v17 }
 0x2e7   :  { %v889_v20 = vadd.f32 1e-09, %v888_v19 }
 0x2e9   :  { %1191 = vlog2.f32 %v889_v20 }
 0x2f6   :  { %v1192_v21 = vpop.eup %1191 }
 0x2f7   :  { %v891_v22 = vmul.f32 0.6931472, %v1192_v21 }
 0x2f9   :  { %v892_v23 = vsub.f32 0.0, %v891_v22 }
 0x2fb   :  { %893 = vst.msk [vmem:[%s1464_s3] sm:$0xff] %vm19_vm1, %v892_v23 }

</bundles_post_ra>
